<compile_context>
chip_gen: v7x
topology: tpu7x:2x2x1
jax: 0.10.0
libtpu: 0.0.40
codegen_flags: <defaults>
</compile_context>

<pallas_src>
import jax
import jax.numpy as jnp
from jax.experimental import pallas as pl
from jax.experimental.pallas import tpu as pltpu

LANE = 128            # padding target for hidden / action dims (lane width, MXU tile)
SUBLANE = 16          # bf16 sublane multiple — padding target for the state dim and batch tile
MAX_BATCH_TILE = 2048


def _round_up(x, m):
    return (x + m - 1) // m * m


def _cdiv(a, b):
    return (a + b - 1) // b


def _dqn_kernel(x_ref, w1_ref, b1_ref, w2_ref, b2_ref, w3_ref, b3_ref, o_ref):
    # x_ref: (TB, S_p) bf16 ; w*: (in_pad, out_pad) bf16 ; b*: (1, out_pad) f32 ; o_ref: (TB, A_p) bf16
    x = x_ref[...]

    h1 = jnp.dot(x, w1_ref[...], preferred_element_type=jnp.float32)
    h1 = jnp.maximum(h1 + b1_ref[...], 0.0)                     # bias + ReLU in f32

    h2 = jnp.dot(h1.astype(jnp.bfloat16), w2_ref[...],
                 preferred_element_type=jnp.float32)
    h2 = jnp.maximum(h2 + b2_ref[...], 0.0)

    q = jnp.dot(h2.astype(jnp.bfloat16), w3_ref[...],
                preferred_element_type=jnp.float32)
    o_ref[...] = (q + b3_ref[...]).astype(o_ref.dtype)          # lane-dense bf16 store


def pad_params(w1, b1, w2, b2, w3, b3):
    """Zero-pad dims (state -> mult of 16, hidden/action -> mult of 128), cast weights to bf16.

    Zero padding never leaks into real Q columns. Call once and reuse."""
    def pad2(w, rows, cols):
        return jnp.pad(w, ((0, rows - w.shape[0]), (0, cols - w.shape[1])))

    S, H1 = w1.shape
    _, H2 = w2.shape
    _, A = w3.shape
    S_p = _round_up(S, SUBLANE)
    H1_p = _round_up(H1, LANE)
    H2_p = _round_up(H2, LANE)
    A_p = _round_up(A, LANE)

    w1p = pad2(w1, S_p, H1_p).astype(jnp.bfloat16)
    w2p = pad2(w2, H1_p, H2_p).astype(jnp.bfloat16)
    w3p = pad2(w3, H2_p, A_p).astype(jnp.bfloat16)
    b1p = jnp.pad(b1, (0, H1_p - H1)).astype(jnp.float32).reshape(1, H1_p)
    b2p = jnp.pad(b2, (0, H2_p - H2)).astype(jnp.float32).reshape(1, H2_p)
    b3p = jnp.pad(b3, (0, A_p - A)).astype(jnp.float32).reshape(1, A_p)
    return w1p, b1p, w2p, b2p, w3p, b3p


def dqn_forward(x, padded_params, num_actions):
    """x: (B, state_size) f32. Returns (B, num_actions) f32 Q-values."""
    w1p, b1p, w2p, b2p, w3p, b3p = padded_params
    B, S = x.shape
    S_p = w1p.shape[0]
    A_p = w3p.shape[1]

    # Balanced batch tiling (avoids the old up-to-2x padding blowup) and >=2 tiles when
    # B >= 32 so the "parallel" grid axis can shard across v7x's two TensorCores.
    num_tiles = _cdiv(B, MAX_BATCH_TILE)
    if B >= 2 * SUBLANE:
        num_tiles = max(num_tiles, 2)
    TB = _round_up(_cdiv(B, num_tiles), SUBLANE)
    grid_b = _cdiv(B, TB)
    B_p = grid_b * TB

    xp = jnp.pad(x, ((0, B_p - B), (0, S_p - S))).astype(jnp.bfloat16)

    flops = 2 * B_p * (S_p * w1p.shape[1]
                       + w2p.shape[0] * w2p.shape[1]
                       + w3p.shape[0] * A_p)
    bytes_accessed = (xp.size * 2
                      + (w1p.size + w2p.size + w3p.size) * 2
                      + (b1p.size + b2p.size + b3p.size) * 4
                      + B_p * A_p * 2)

    out = pl.pallas_call(
        _dqn_kernel,
        out_shape=jax.ShapeDtypeStruct((B_p, A_p), jnp.bfloat16),
        grid=(grid_b,),
        in_specs=[
            pl.BlockSpec((TB, S_p), lambda i: (i, 0)),        # x: tiled on batch, full S_p lanes
            pl.BlockSpec(w1p.shape, lambda i: (0, 0)),        # weights/biases resident across tiles
            pl.BlockSpec(b1p.shape, lambda i: (0, 0)),
            pl.BlockSpec(w2p.shape, lambda i: (0, 0)),
            pl.BlockSpec(b2p.shape, lambda i: (0, 0)),
            pl.BlockSpec(w3p.shape, lambda i: (0, 0)),
            pl.BlockSpec(b3p.shape, lambda i: (0, 0)),
        ],
        out_specs=pl.BlockSpec((TB, A_p), lambda i: (i, 0)),
        compiler_params=pltpu.CompilerParams(
            dimension_semantics=("parallel",)),
        cost_estimate=pl.CostEstimate(flops=flops, transcendentals=0,
                                      bytes_accessed=bytes_accessed),
    )(xp, w1p, b1p, w2p, b2p, w3p, b3p)

    return out[:B, :num_actions].astype(jnp.float32)


if __name__ == "__main__":
    key = jax.random.PRNGKey(0)
    state_size = 2     # MountainCar-v0 observation dim
    action_size = 3    # MountainCar-v0 action count
    hidden = 64
    batch = 16

    ks = jax.random.split(key, 7)

    # PyTorch nn.Linear-style init: U(-1/sqrt(fan_in), 1/sqrt(fan_in)).
    # Weights stored as (in_features, out_features) so y = x @ W + b.
    def init(k, fan_in, shape):
        bound = 1.0 / (fan_in ** 0.5)
        return jax.random.uniform(k, shape, jnp.float32, -bound, bound)

    w1 = init(ks[0], state_size, (state_size, hidden))
    b1 = init(ks[1], state_size, (hidden,))
    w2 = init(ks[2], hidden, (hidden, hidden))
    b2 = init(ks[3], hidden, (hidden,))
    w3 = init(ks[4], hidden, (hidden, action_size))
    b3 = init(ks[5], hidden, (action_size,))
    x = jax.random.uniform(ks[6], (batch, state_size), jnp.float32, -1.0, 1.0)

    padded = pad_params(w1, b1, w2, b2, w3, b3)      # one-time padding / bf16 cast
    q = dqn_forward(x, padded, action_size)
    q = jax.block_until_ready(q)

    # Pure-JAX f32 reference (tolerance covers bf16 matmul inputs + bf16 output store).
    h1 = jnp.maximum(x @ w1 + b1, 0.0)
    h2 = jnp.maximum(h1 @ w2 + b2, 0.0)
    q_ref = h2 @ w3 + b3

    assert q.shape == (batch, action_size)
    err = float(jnp.max(jnp.abs(q - q_ref)))
    assert err < 1e-1, f"max abs error too large: {err}"
    print("KERNEL_OK")
</pallas_src>

<mosaic_0001>
module attributes {stable_mosaic.version = 11 : i64} {
  func.func @_dqn_kernel(%arg0: i32, %arg1: memref<16x16xbf16, #tpu.memory_space<vmem>>, %arg2: memref<16x128xbf16, #tpu.memory_space<vmem>>, %arg3: memref<1x128xf32, #tpu.memory_space<vmem>>, %arg4: memref<128x128xbf16, #tpu.memory_space<vmem>>, %arg5: memref<1x128xf32, #tpu.memory_space<vmem>>, %arg6: memref<128x128xbf16, #tpu.memory_space<vmem>>, %arg7: memref<1x128xf32, #tpu.memory_space<vmem>>, %arg8: memref<16x128xbf16, #tpu.memory_space<vmem>>) attributes {dimension_semantics = [#tpu.dimension_semantics<parallel>], iteration_bounds = array<i64: 1>, scalar_prefetch = 0 : i64, scratch_operands = 0 : i64, tpu.core_type = #tpu.core_type<tc>, window_params = [{transform_indices = @transform_0, window_bounds = array<i64: 16, 16>}, {pipeline_mode = #tpu.pipeline_mode<synchronous>, transform_indices = @transform_1, window_bounds = array<i64: 16, 128>}, {pipeline_mode = #tpu.pipeline_mode<synchronous>, transform_indices = @transform_2, window_bounds = array<i64: 1, 128>}, {pipeline_mode = #tpu.pipeline_mode<synchronous>, transform_indices = @transform_3, window_bounds = array<i64: 128, 128>}, {pipeline_mode = #tpu.pipeline_mode<synchronous>, transform_indices = @transform_4, window_bounds = array<i64: 1, 128>}, {pipeline_mode = #tpu.pipeline_mode<synchronous>, transform_indices = @transform_5, window_bounds = array<i64: 128, 128>}, {pipeline_mode = #tpu.pipeline_mode<synchronous>, transform_indices = @transform_6, window_bounds = array<i64: 1, 128>}, {transform_indices = @transform_7, window_bounds = array<i64: 16, 128>}]} {
    %c0 = arith.constant 0 : index
    %c0_0 = arith.constant 0 : index
    %0 = vector.load %arg1[%c0, %c0_0] : memref<16x16xbf16, #tpu.memory_space<vmem>>, vector<16x16xbf16>
    %c0_1 = arith.constant 0 : index
    %c0_2 = arith.constant 0 : index
    %1 = vector.load %arg2[%c0_1, %c0_2] : memref<16x128xbf16, #tpu.memory_space<vmem>>, vector<16x128xbf16>
    %cst = arith.constant dense<0.000000e+00> : vector<16x128xf32>
    %2 = tpu.matmul %0, %1, %cst {dimension_numbers = #tpu.dot_dimension_numbers<[1], [0], [0], [1], [0, 0, 1, 1], [], []>} : vector<16x16xbf16>, vector<16x128xbf16>, vector<16x128xf32> -> vector<16x128xf32>
    %c0_3 = arith.constant 0 : index
    %c0_4 = arith.constant 0 : index
    %3 = vector.load %arg3[%c0_3, %c0_4] : memref<1x128xf32, #tpu.memory_space<vmem>>, vector<1x128xf32>
    %4 = vector.broadcast %3 : vector<1x128xf32> to vector<16x128xf32>
    %5 = arith.addf %2, %4 : vector<16x128xf32>
    %cst_5 = arith.constant 0.000000e+00 : f32
    %6 = vector.broadcast %cst_5 : f32 to vector<16x128xf32>
    %7 = arith.maximumf %5, %6 : vector<16x128xf32>
    %8 = arith.truncf %7 : vector<16x128xf32> to vector<16x128xbf16>
    %c0_6 = arith.constant 0 : index
    %c0_7 = arith.constant 0 : index
    %9 = vector.load %arg4[%c0_6, %c0_7] : memref<128x128xbf16, #tpu.memory_space<vmem>>, vector<128x128xbf16>
    %cst_8 = arith.constant dense<0.000000e+00> : vector<16x128xf32>
    %10 = tpu.matmul %8, %9, %cst_8 {dimension_numbers = #tpu.dot_dimension_numbers<[1], [0], [0], [1], [0, 0, 1, 1], [], []>} : vector<16x128xbf16>, vector<128x128xbf16>, vector<16x128xf32> -> vector<16x128xf32>
    %c0_9 = arith.constant 0 : index
    %c0_10 = arith.constant 0 : index
    %11 = vector.load %arg5[%c0_9, %c0_10] : memref<1x128xf32, #tpu.memory_space<vmem>>, vector<1x128xf32>
    %12 = vector.broadcast %11 : vector<1x128xf32> to vector<16x128xf32>
    %13 = arith.addf %10, %12 : vector<16x128xf32>
    %cst_11 = arith.constant 0.000000e+00 : f32
    %14 = vector.broadcast %cst_11 : f32 to vector<16x128xf32>
    %15 = arith.maximumf %13, %14 : vector<16x128xf32>
    %16 = arith.truncf %15 : vector<16x128xf32> to vector<16x128xbf16>
    %c0_12 = arith.constant 0 : index
    %c0_13 = arith.constant 0 : index
    %17 = vector.load %arg6[%c0_12, %c0_13] : memref<128x128xbf16, #tpu.memory_space<vmem>>, vector<128x128xbf16>
    %cst_14 = arith.constant dense<0.000000e+00> : vector<16x128xf32>
    %18 = tpu.matmul %16, %17, %cst_14 {dimension_numbers = #tpu.dot_dimension_numbers<[1], [0], [0], [1], [0, 0, 1, 1], [], []>} : vector<16x128xbf16>, vector<128x128xbf16>, vector<16x128xf32> -> vector<16x128xf32>
    %c0_15 = arith.constant 0 : index
    %c0_16 = arith.constant 0 : index
    %19 = vector.load %arg7[%c0_15, %c0_16] : memref<1x128xf32, #tpu.memory_space<vmem>>, vector<1x128xf32>
    %20 = vector.broadcast %19 : vector<1x128xf32> to vector<16x128xf32>
    %21 = arith.addf %18, %20 : vector<16x128xf32>
    %22 = arith.truncf %21 : vector<16x128xf32> to vector<16x128xbf16>
    %c0_17 = arith.constant 0 : index
    %c0_18 = arith.constant 0 : index
    %23 = vector.load %arg8[%c0_17, %c0_18] : memref<16x128xbf16, #tpu.memory_space<vmem>>, vector<16x128xbf16>
    tpu.vector_store %arg8[%c0_17, %c0_18], %22 {strides = array<i32>} : memref<16x128xbf16, #tpu.memory_space<vmem>>, vector<16x128xbf16>,
    return
  }
  func.func @transform_0(%arg0: i32) -> (i32, i32) {
    %c0_i32 = arith.constant 0 : i32
    %c0_i32_0 = arith.constant 0 : i32
    return %arg0, %c0_i32 : i32, i32
  }
  func.func @transform_1(%arg0: i32) -> (i32, i32) {
    %c0_i32 = arith.constant 0 : i32
    %c0_i32_0 = arith.constant 0 : i32
    %c0_i32_1 = arith.constant 0 : i32
    return %c0_i32, %c0_i32_0 : i32, i32
  }
  func.func @transform_2(%arg0: i32) -> (i32, i32) {
    %c0_i32 = arith.constant 0 : i32
    %c0_i32_0 = arith.constant 0 : i32
    %c0_i32_1 = arith.constant 0 : i32
    return %c0_i32, %c0_i32_0 : i32, i32
  }
  func.func @transform_3(%arg0: i32) -> (i32, i32) {
    %c0_i32 = arith.constant 0 : i32
    %c0_i32_0 = arith.constant 0 : i32
    %c0_i32_1 = arith.constant 0 : i32
    return %c0_i32, %c0_i32_0 : i32, i32
  }
  func.func @transform_4(%arg0: i32) -> (i32, i32) {
    %c0_i32 = arith.constant 0 : i32
    %c0_i32_0 = arith.constant 0 : i32
    %c0_i32_1 = arith.constant 0 : i32
    return %c0_i32, %c0_i32_0 : i32, i32
  }
  func.func @transform_5(%arg0: i32) -> (i32, i32) {
    %c0_i32 = arith.constant 0 : i32
    %c0_i32_0 = arith.constant 0 : i32
    %c0_i32_1 = arith.constant 0 : i32
    return %c0_i32, %c0_i32_0 : i32, i32
  }
  func.func @transform_6(%arg0: i32) -> (i32, i32) {
    %c0_i32 = arith.constant 0 : i32
    %c0_i32_0 = arith.constant 0 : i32
    %c0_i32_1 = arith.constant 0 : i32
    return %c0_i32, %c0_i32_0 : i32, i32
  }
  func.func @transform_7(%arg0: i32) -> (i32, i32) {
    %c0_i32 = arith.constant 0 : i32
    %c0_i32_0 = arith.constant 0 : i32
    return %arg0, %c0_i32 : i32, i32
  }
}

</mosaic_0001>

<bundles_post_ra>
// kernel: tpu_custom_call.1
= control target key start
LH: loop header
LB: loop body
LE: loop exit
PB: predicated region body
PF: predicated region fallthrough
CT: control target
= control target key end

     0   :  { %12 = vsyncpa [#allocation3], 0  ;;  %s818_s0 = inlined_call_operand.hbm [shape: bf16[16,16], index: 0, kind: input, shape index: {}]   ;;  %s819_s1 = inlined_call_operand.hbm [shape: bf16[16,128], index: 1, kind: input, shape index: {}]   ;;  %s820_s2 = inlined_call_operand.vmem [shape: f32[1,128], index: 2, kind: input, shape index: {}]   ;;  %s821_s3 = inlined_call_operand.hbm [shape: bf16[128,128], index: 3, kind: input, shape index: {}]   ;;  %s822_s4 = inlined_call_operand.vmem [shape: f32[1,128], index: 4, kind: input, shape index: {}]   ;;  %s823_s5 = inlined_call_operand.hbm [shape: bf16[128,128], index: 5, kind: input, shape index: {}]   ;;  %s824_s6 = inlined_call_operand.vmem [shape: f32[1,128], index: 6, kind: input, shape index: {}]   ;;  %s825_s7 = inlined_call_operand.hbm [shape: bf16[16,128], index: 7, kind: output, shape index: {}]  }
   0x1   :  { %13 = vsyncpa [#allocation6], 0 }
   0x2   :  { %14 = vsyncpa [#allocation9], 0 }
   0x3   :  { %15 = vsyncpa [#allocation4], 0  ;;  %s651_s24 = smov [#allocation5]   ;;  %s652_s26 = smov [#allocation2]  }
   0x4   :  { %s33_s25 = sshll.u32 %s651_s24, 4  ;;  %s21_s27 = sshll.u32 %s652_s26, 4  ;;  %s34_s25 = int_to_ptr.vmem [resolvable:$true] %s33_s25  ;;  %s700_s27 = int_to_ptr.vmem [resolvable:$true] %s21_s27 }
   0x5   :  { %s533_s30 = scalar_lea.hbm %s819_s1, 128 }
   0x6   :  { %p534_p0 = scmp.ne.s32.totalorder %s819_s1, %s533_s30  ;;  %p537_p1 = scmp.lt.u32.totalorder %s533_s30, %s819_s1 }
   0x8   :  { %p539_p2 = pnand %p537_p1, %p534_p0 }
   0xa   :  { %542 = shalt.err (!%p539_p2)
}
   0xb   :  { %s543_s12 = scalar_lea.vmem %s34_s25, 128  ;;  %p548_p4 = scmp.lt.s32.totalorder %s34_s25, %s34_s25 }
   0xc   :  { %p544_p3 = scmp.ne.s32.totalorder %s34_s25, %s543_s12  ;;  %p549_p5 = scmp.lt.s32.totalorder %s543_s12, %s543_s12 }
   0xe   :  { %p550_p6 = por %p549_p5, %p548_p4 }
  0x10   :  { %p551_p7 = pnand %p550_p6, %p544_p3 }
  0x12   :  { %554 = shalt.err (!%p551_p7)
}
  0x13   :  { %s653_s13 = smov 64   ;;  %s654_s14 = smov 4  }
  0x14   :  { %39 = dma.hbm_to_vmem [thread:$0]  %s819_s1, 128, %s34_s25, [#allocation6], %s653_s13, %s653_s13, %s654_s14  }
  0x15   :  { %s555_s19 = scalar_lea.hbm %s818_s0, 128 }
  0x16   :  { %p556_p8 = scmp.ne.s32.totalorder %s818_s0, %s555_s19  ;;  %p559_p9 = scmp.lt.u32.totalorder %s555_s19, %s818_s0 }
  0x18   :  { %p561_p10 = pnand %p559_p9, %p556_p8 }
  0x1a   :  { %564 = shalt.err (!%p561_p10)
}
  0x1b   :  { %s565_s24 = scalar_lea.vmem %s700_s27, 128  ;;  %p570_p12 = scmp.lt.s32.totalorder %s700_s27, %s700_s27 }
  0x1c   :  { %p566_p11 = scmp.ne.s32.totalorder %s700_s27, %s565_s24  ;;  %p571_p13 = scmp.lt.s32.totalorder %s565_s24, %s565_s24 }
  0x1e   :  { %p572_p0 = por %p571_p13, %p570_p12 }
  0x20   :  { %p573_p1 = pnand %p572_p0, %p566_p11 }
  0x22   :  { %576 = shalt.err (!%p573_p1)
}
  0x23   :  { %27 = dma.hbm_to_vmem [thread:$0]  %s818_s0, 128, %s700_s27, [#allocation3], %s653_s13, %s653_s13, %s654_s14  }
  0x24   :  { %s655_s26 = smov [#allocation7]   ;;  %s656_s29 = smov [#allocation8]  }
  0x25   :  { %s47_s28 = sshll.u32 %s655_s26, 4  ;;  %s61_s30 = sshll.u32 %s656_s29, 4  ;;  %s48_s28 = int_to_ptr.vmem [resolvable:$true] %s47_s28  ;;  %s737_s30 = int_to_ptr.vmem [resolvable:$true] %s61_s30 }
  0x26   :  { %s577_s10 = scalar_lea.hbm %s821_s3, 1024 }
  0x27   :  { %p578_p2 = scmp.ne.s32.totalorder %s821_s3, %s577_s10  ;;  %p581_p3 = scmp.lt.u32.totalorder %s577_s10, %s821_s3 }
  0x29   :  { %p583_p4 = pnand %p581_p3, %p578_p2 }
  0x2b   :  { %586 = shalt.err (!%p583_p4)
}
  0x2c   :  { %s587_s0 = scalar_lea.vmem %s48_s28, 1024  ;;  %p592_p6 = scmp.lt.s32.totalorder %s48_s28, %s48_s28 }
  0x2d   :  { %p588_p5 = scmp.ne.s32.totalorder %s48_s28, %s587_s0  ;;  %p593_p7 = scmp.lt.s32.totalorder %s587_s0, %s587_s0 }
  0x2f   :  { %p594_p8 = por %p593_p7, %p592_p6 }
  0x31   :  { %p595_p9 = pnand %p594_p8, %p588_p5 }
  0x33   :  { %598 = shalt.err (!%p595_p9)
}
  0x34   :  { %53 = dma.hbm_to_vmem [thread:$0]  %s821_s3, 1024, %s48_s28, [#allocation6], %s653_s13, %s653_s13, %s654_s14  }
  0x35   :  { %s599_s20 = scalar_lea.hbm %s823_s5, 1024 }
  0x36   :  { %p600_p10 = scmp.ne.s32.totalorder %s823_s5, %s599_s20  ;;  %p603_p11 = scmp.lt.u32.totalorder %s599_s20, %s823_s5 }
  0x38   :  { %p605_p12 = pnand %p603_p11, %p600_p10 }
  0x3a   :  { %608 = shalt.err (!%p605_p12)
}
  0x3b   :  { %s609_s1 = scalar_lea.vmem %s737_s30, 1024  ;;  %p614_p0 = scmp.lt.s32.totalorder %s737_s30, %s737_s30 }
  0x3c   :  { %p610_p13 = scmp.ne.s32.totalorder %s737_s30, %s609_s1  ;;  %p615_p1 = scmp.lt.s32.totalorder %s609_s1, %s609_s1 }
  0x3e   :  { %p616_p2 = por %p615_p1, %p614_p0 }
  0x40   :  { %p617_p3 = pnand %p616_p2, %p610_p13 }
  0x42   :  { %620 = shalt.err (!%p617_p3)
}
  0x43   :  { %67 = dma.hbm_to_vmem [thread:$0]  %s823_s5, 1024, %s737_s30, [#allocation9], %s653_s13, %s653_s13, %s654_s14  }
  0x44   :  { %643 = dma.done.wait [#allocation3], 128  }
  0x45   :  { %644 = vsyncadd [#allocation3], 4294967168 }
  0x46   :  { %645 = dma.done.wait [#allocation6], 1152  }
  0x47   :  { %646 = vsyncadd [#allocation6], 4294966144 }
  0x48   :  { %647 = dma.done.wait [#allocation9], 1024  }
  0x49   :  { %648 = vsyncadd [#allocation9], 4294966272  ;;  %v657_v0 = vmov 0.0   ;;  %vm658_vm0 = vmmov 0   ;;  %v515_v1 = vld [vmem:[#allocation5] sm:$0xff]   ;;  %v516_v2 = vld [vmem:[#allocation2] sm:$0xff]  }
  0x4a   :  { %460 = vmatprep.subr.bf16.mxu0 %v657_v0  ;;  %462 = vmatprep.mubr.msk.bf16.mxu0 %vm658_vm0, %v657_v0  ;;  %vm105_vm1 = vcmask 130048   ;;  %v517_v3 = vld [vmem:[#allocation7] sm:$0xff]   ;;  %v518_v4 = vld [vmem:[#allocation7 + $0x8] sm:$0xff]   ;;  %v519_v5 = vld [vmem:[#allocation7 + $0x10] sm:$0xff]   ;;  %s659_s8 = smov [#allocation10]  }
  0x4b   :  { %466 = vmatprep.subr.bf16.mxu1 %v657_v0  ;;  %482 = vmatprep.mubr.msk.bf16.mxu1 %vm658_vm0, %v657_v0  ;;  %v520_v6 = vld [vmem:[#allocation7 + $0x18] sm:$0xff]   ;;  %v521_v7 = vld [vmem:[#allocation7 + $0x20] sm:$0xff]   ;;  %v522_v8 = vld [vmem:[#allocation7 + $0x28] sm:$0xff]   ;;  %s395_s9 = sshll.u32 %s659_s8, 4  ;;  %s396_s9 = int_to_ptr.vmem [resolvable:$true] %s395_s9 }
  0x4c   :  { %461 = vmatpush3.bf16.msra.mxu0 %v515_v1  ;;  %467 = vmatpush3.bf16.msra.mxu1 %v517_v3  ;;  %v523_v9 = vld [vmem:[#allocation7 + $0x30] sm:$0xff]   ;;  %v524_v10 = vld [vmem:[#allocation7 + $0x38] sm:$0xff]   ;;  %v525_v11 = vld [vmem:[#allocation8] sm:$0xff]   ;;  %p626_p5 = scmp.lt.s32.totalorder %s396_s9, %s396_s9 }
  0x4d   :  { %486 = vmatprep.subr.bf16.mxu0 %v657_v0  ;;  %468 = vmatprep.subr.bf16.mxu1 %v657_v0  ;;  %v526_v12 = vld [vmem:[#allocation8 + $0x8] sm:$0xff]   ;;  %v527_v13 = vld [vmem:[#allocation8 + $0x10] sm:$0xff]   ;;  %v528_v14 = vld [vmem:[#allocation8 + $0x18] sm:$0xff]  }
  0x4e   :  { %v529_v15 = vld [vmem:[#allocation8 + $0x20] sm:$0xff]   ;;  %v530_v16 = vld [vmem:[#allocation8 + $0x28] sm:$0xff]   ;;  %v409_v17 = vld [vmem:[%s820_s2] ss:$0 sm:$0xff] }
  0x4f   :  { %463 = vmatmul.mubr.msk.bf16.vlgmr.msra.gmra.mrb[0].mxu0 %vm105_vm1, %v516_v2  ;;  %v531_v27 = vld [vmem:[#allocation8 + $0x30] sm:$0xff]   ;;  %v532_v28 = vld [vmem:[#allocation8 + $0x38] sm:$0xff]  }
  0x50   :  { %502 = vmatprep.mubr.msk.bf16.mxu0 %vm658_vm0, %v657_v0  ;;  %469 = vmatpush3.bf16.msra.mxu1 %v518_v4  ;;  %v413_v29 = vld [vmem:[%s822_s4] ss:$0 sm:$0xff]  ;;  %s621_s4 = scalar_lea.vmem %s396_s9, 128 }
  0x51   :  { %470 = vmatprep.subr.bf16.mxu1 %v657_v0  ;;  %487 = vmatpush3.bf16.msra.mxu0 %v525_v11  ;;  %v422_v39 = vld [vmem:[%s824_s6] ss:$0 sm:$0xff]  ;;  %p622_p4 = scmp.ne.s32.totalorder %s396_s9, %s621_s4  ;;  %p627_p6 = scmp.lt.s32.totalorder %s621_s4, %s621_s4 }
  0x52   :  { %488 = vmatprep.subr.bf16.mxu0 %v657_v0 }
  0x53   :  { %p628_p7 = por %p627_p6, %p626_p5 }
  0x54   :  { %471 = vmatpush3.bf16.msra.mxu1 %v519_v5 }
  0x55   :  { %472 = vmatprep.subr.bf16.mxu1 %v657_v0  ;;  %489 = vmatpush3.bf16.msra.mxu0 %v526_v12  ;;  %p629_p8 = pnand %p628_p7, %p622_p4 }
  0x56   :  { %490 = vmatprep.subr.bf16.mxu0 %v657_v0 }
  0x58   :  { %473 = vmatpush3.bf16.msra.mxu1 %v520_v6 }
  0x59   :  { %474 = vmatprep.subr.bf16.mxu1 %v657_v0  ;;  %491 = vmatpush3.bf16.msra.mxu0 %v527_v13 }
  0x5a   :  { %492 = vmatprep.subr.bf16.mxu0 %v657_v0 }
  0x5c   :  { %475 = vmatpush3.bf16.msra.mxu1 %v521_v7 }
  0x5d   :  { %476 = vmatprep.subr.bf16.mxu1 %v657_v0  ;;  %493 = vmatpush3.bf16.msra.mxu0 %v528_v14 }
  0x5e   :  { %494 = vmatprep.subr.bf16.mxu0 %v657_v0 }
  0x60   :  { %477 = vmatpush3.bf16.msra.mxu1 %v522_v8 }
  0x61   :  { %478 = vmatprep.subr.bf16.mxu1 %v657_v0  ;;  %495 = vmatpush3.bf16.msra.mxu0 %v529_v15 }
  0x62   :  { %496 = vmatprep.subr.bf16.mxu0 %v657_v0 }
  0x64   :  { %479 = vmatpush3.bf16.msra.mxu1 %v523_v9 }
  0x65   :  { %480 = vmatprep.subr.bf16.mxu1 %v657_v0  ;;  %497 = vmatpush3.bf16.msra.mxu0 %v530_v16 }
  0x66   :  { %498 = vmatprep.subr.bf16.mxu0 %v657_v0 }
  0x68   :  { %481 = vmatpush3.bf16.msra.mxu1 %v524_v10 }
  0x69   :  { %499 = vmatpush3.bf16.msra.mxu0 %v531_v27 }
  0x6a   :  { %500 = vmatprep.subr.bf16.mxu0 %v657_v0 }
  0x6d   :  { %501 = vmatpush3.bf16.msra.mxu0 %v532_v28 }
 0x122   :  { %v143_v18 = vpop.f32.mrb[0].mxu0 }
 0x123   :  { %v144_v19 = vadd.f32 %v409_v17, %v143_v18  ;;  %v464_v20 = vpop.f32.mrb[1].mxu0 }
 0x124   :  { %v146_v21 = vpop.f32.mrb[2].mxu0 }
 0x125   :  { %v147_v22 = vadd.f32 %v409_v17, %v146_v21  ;;  %v465_v23 = vpop.f32.mrb[3].mxu0  ;;  %v150_v24 = vmax.f32 %v144_v19, 0.0 }
 0x127   :  { %v151_v25 = vmax.f32 %v147_v22, 0.0 }
 0x129   :  { %v152_v26 = vpack.c.bf16 %v151_v25, %v150_v24 }
 0x12b   :  { %483 = vmatmul.mubr.bf16.vlgmr.msra.gmra.mrb[0].mxu1 %v152_v26 }
 0x1fe   :  { %v258_v30 = vpop.f32.mrb[0].mxu1 }
 0x1ff   :  { %v259_v31 = vadd.f32 %v413_v29, %v258_v30  ;;  %v484_v32 = vpop.f32.mrb[1].mxu1 }
 0x200   :  { %v261_v33 = vpop.f32.mrb[2].mxu1 }
 0x201   :  { %v262_v34 = vadd.f32 %v413_v29, %v261_v33  ;;  %v485_v35 = vpop.f32.mrb[3].mxu1  ;;  %v265_v36 = vmax.f32 %v259_v31, 0.0 }
 0x203   :  { %v266_v37 = vmax.f32 %v262_v34, 0.0 }
 0x205   :  { %v267_v38 = vpack.c.bf16 %v266_v37, %v265_v36 }
 0x207   :  { %503 = vmatmul.mubr.bf16.vlgmr.msra.gmra.mrb[4].mxu0 %v267_v38 }
 0x2da   :  { %v373_v40 = vpop.f32.mrb[4].mxu0 }
 0x2db   :  { %v504_v41 = vpop.f32.mrb[5].mxu0  ;;  %v374_v43 = vadd.f32 %v422_v39, %v373_v40 }
 0x2dc   :  { %v376_v42 = vpop.f32.mrb[6].mxu0 }
 0x2dd   :  { %v377_v44 = vadd.f32 %v422_v39, %v376_v42  ;;  %v505_v45 = vpop.f32.mrb[7].mxu0 }
 0x2df   :  { %v438_v46 = vpack.c.bf16 %v377_v44, %v374_v43 }
 0x2e1   :  { %439 = vst [vmem:[#allocation10] sm:$0xff] %v438_v46  }
 0x2e2   :  { %632 = shalt.err (!%p629_p8)
}
 0x2e3   :  { %s633_s11 = scalar_lea.hbm %s825_s7, 128 }
 0x2e4   :  { %p634_p9 = scmp.ne.s32.totalorder %s825_s7, %s633_s11  ;;  %p637_p10 = scmp.lt.u32.totalorder %s633_s11, %s825_s7 }
 0x2e6   :  { %p639_p11 = pnand %p637_p10, %p634_p9 }
 0x2e8   :  { %642 = shalt.err (!%p639_p11)
}
 0x2e9   :  { %401 = dma.vmem_to_hbm [thread:$0]  %s396_s9, 128, %s825_s7, [#allocation4], %s653_s13, %s653_s13, %s654_s14  }
 0x2ea   :  { %649 = dma.done.wait [#allocation4], 128  }
 0x2eb   :  { %650 = vsyncadd [#allocation4], 4294967168 }
 0x2ec   :  { %405 = vsyncpa [#allocation3], 1 }
 0x2ed   :  { %406 = vsyncpa [#allocation6], 1 }
 0x2ee   :  { %407 = vsyncpa [#allocation9], 1 }
 0x2ef   :  { %408 = vsyncpa [#allocation4], 1 }

</bundles_post_ra>
